<compile_context>
chip_gen: v6e
topology: v6e:2x2x1
jax: 0.10.0
libtpu: 0.0.40
codegen_flags: <defaults>
</compile_context>

<pallas_src>
import numpy as np
import jax
import jax.numpy as jnp
from jax.experimental import pallas as pl
from jax.experimental.pallas import tpu as pltpu


_HBM_ROWS_PER_STEP = 8


def _round_up(n: int, m: int) -> int:
    return ((n + m - 1) // m) * m


def _usable_vmem_bytes() -> int:
    """Per-TensorCore VMEM we allow ourselves (capacity minus headroom)."""
    cap = 64 << 20  # conservative default (v7x has 64 MiB per TensorCore)
    try:
        cap = int(getattr(pltpu.get_tpu_info(), "vmem_capacity_bytes", cap))
    except Exception:
        pass
    # Leave >= 8 MiB (and >= capacity/8) for output/index double-buffers and Mosaic
    # internal scratch: ~56 MiB usable on v7x, ~112 MiB usable on v5e/v6e.
    return cap - max(8 << 20, cap // 8)


# --------------------------------------------------------------------------- kernels


def _onehot_gather_kernel(idx_ref, table_ref, out_ref):
    """MXU one-hot gather: out = onehot(idx) @ table.

    idx_ref   : VMEM (block_rows, 1) int32   -- this block's row indices
    table_ref : VMEM (V, D)                  -- whole table, resident
    out_ref   : VMEM (block_rows, D) or lane-packed (block_rows*D//128, 128)
    """
    idx = idx_ref[...]                                            # (br, 1)
    br = idx.shape[0]
    v = table_ref.shape[0]
    iota = jax.lax.broadcasted_iota(jnp.int32, (br, v), 1)
    onehot = (iota == idx).astype(jnp.float32)                    # exact 0.0 / 1.0
    rows = jnp.dot(onehot, table_ref[...].astype(jnp.float32),
                   preferred_element_type=jnp.float32)            # MXU gather
    out_ref[...] = rows.astype(out_ref.dtype).reshape(out_ref.shape)


def _take_gather_kernel(idx_ref, table_ref, out_ref):
    """Vectorized row gather on the VMEM-resident table (larger resident vocab)."""
    idx = idx_ref[...][:, 0]                                      # (br,)
    rows = jnp.take(table_ref[...], idx, axis=0, mode="clip")
    out_ref[...] = rows.astype(out_ref.dtype).reshape(out_ref.shape)


def _hbm_row_gather_kernel(idx_smem_ref, *refs):
    """Large-table fallback: the Element-indexed specs already DMA'd each row."""
    del idx_smem_ref                       # indices are consumed by the index_maps
    out_ref = refs[-1]
    for j, row_ref in enumerate(refs[:-1]):
        out_ref[pl.ds(j, 1), :] = row_ref[...]


# --------------------------------------------------------------------------- builders


def _build_resident_call(*, V, D, dtype, n_pad, block_rows, use_onehot, pack,
                         single_buffer, vmem_limit, semantics, table_bytes):
    itemsize = jnp.dtype(dtype).itemsize
    if pack:
        group = 128 // D
        out_shape = (n_pad // group, 128)
        out_block = (block_rows // group, 128)
    else:
        out_shape = (n_pad, D)
        out_block = (block_rows, D)

    table_kwargs = {"pipeline_mode": pl.Buffered(1)} if single_buffer else {}
    in_specs = [
        pl.BlockSpec((block_rows, 1), lambda i: (i, 0)),          # indices (VMEM block)
        pl.BlockSpec((V, D), lambda i: (0, 0), **table_kwargs),   # resident table
    ]
    out_specs = pl.BlockSpec(out_block, lambda i: (i, 0))
    kernel = _onehot_gather_kernel if use_onehot else _take_gather_kernel

    return pl.pallas_call(
        kernel,
        out_shape=jax.ShapeDtypeStruct(out_shape, dtype),
        grid=(n_pad // block_rows,),
        in_specs=in_specs,
        out_specs=out_specs,
        compiler_params=pltpu.CompilerParams(
            dimension_semantics=semantics,
            vmem_limit_bytes=vmem_limit,
        ),
        cost_estimate=pl.CostEstimate(
            flops=(2 * n_pad * V * D) if use_onehot else 0,
            transcendentals=0,
            bytes_accessed=int(table_bytes + n_pad * D * itemsize + n_pad * 4),
        ),
    )


def _build_hbm_row_gather_call(*, D, dtype, n_pad, rows_per_step):
    R = rows_per_step
    row_specs = [
        pl.BlockSpec((pl.Element(1), D),
                     (lambda i, idx_ref, j=j: (idx_ref[i * R + j], 0)))
        for j in range(R)
    ]
    itemsize = jnp.dtype(dtype).itemsize
    return pl.pallas_call(
        _hbm_row_gather_kernel,
        out_shape=jax.ShapeDtypeStruct((n_pad, D), dtype),
        grid_spec=pltpu.PrefetchScalarGridSpec(
            num_scalar_prefetch=1,
            grid=(n_pad // R,),
            in_specs=row_specs,
            out_specs=pl.BlockSpec((R, D), lambda i, idx_ref: (i, 0)),
        ),
        compiler_params=pltpu.CompilerParams(
            dimension_semantics=("arbitrary",)),
        cost_estimate=pl.CostEstimate(
            flops=0, transcendentals=0,
            bytes_accessed=int(n_pad * D * itemsize + n_pad * 4)),
    )


# --------------------------------------------------------------------------- wrapper


def embedding_gather(table: jax.Array, flat_idx: jax.Array) -> jax.Array:
    """Gather rows of `table` (V, D) at `flat_idx` (N,) -> (N, D) via Pallas."""
    V, D = table.shape
    N = int(flat_idx.shape[0])
    if N == 0:
        return jnp.zeros((0, D), table.dtype)
    itemsize = jnp.dtype(table.dtype).itemsize
    table_bytes = V * D * itemsize
    gathered_bytes = N * D * itemsize

    # torch would raise on OOB indices; clamping keeps gathers / DMAs in-bounds.
    # TODO(synk): optionally pl.debug_check the raw indices under enable_debug_checks
    # so out-of-range inputs are caught in testing instead of silently remapped.
    flat_idx = jnp.clip(flat_idx.astype(jnp.int32), 0, V - 1)

    usable_vmem = _usable_vmem_bytes()

    # ---- resident-table path sizing ---------------------------------------------
    use_onehot = V <= 2048                       # MXU one-hot gather for small vocab
    if use_onehot:
        # Bound the (block_rows, V) f32 one-hot intermediate to ~2 MiB.
        max_br = max(256, ((2 << 20) // max(4 * V, 1)) // 256 * 256)
        target_br = min(1024, max_br)
    else:
        target_br = 1024
    block_rows = max(8, min(target_br, _round_up(N, 256)))

    out_block_bytes = block_rows * D * itemsize
    idx_block_bytes = block_rows * 4
    onehot_bytes = block_rows * V * 4 if use_onehot else 0
    needed_single = (table_bytes + 2 * (out_block_bytes + idx_block_bytes)
                     + onehot_bytes + (2 << 20))

    # Prefer the direct HBM row gather when the table is big and fetching it would
    # read far more bytes than we actually gather (the dominant regime on v5e HBM).
    big_table_small_gather = (table_bytes > (4 << 20)
                              and table_bytes > 8 * max(gathered_bytes, 1))
    resident = needed_single <= usable_vmem and not big_table_small_gather

    if resident:
        n_pad = pl.cdiv(N, block_rows) * block_rows
        idx = flat_idx
        if n_pad != N:
            idx = jnp.concatenate([idx, jnp.zeros((n_pad - N,), jnp.int32)])
        idx2d = idx.reshape(n_pad, 1)
        num_blocks = n_pad // block_rows
        # Only shard across TensorCores (v7x) when the gather phase dominates the
        # one-time table fetch; otherwise both cores just duplicate that fetch.
        semantics = (("parallel",)
                     if num_blocks >= 2 and gathered_bytes >= table_bytes
                     else ("arbitrary",))
        can_pack = (D < 128 and 128 % D == 0
                    and (block_rows * D) % 128 == 0
                    and (block_rows * D // 128) % 8 == 0)

        # Attempt ladder: lane-packed output + single-buffered table first; fall back
        # to plainer variants if a particular compiler build rejects one of them.
        attempts = []
        if can_pack:
            attempts.append((True, True))
        attempts.append((False, True))
        if can_pack:
            attempts.append((True, False))
        attempts.append((False, False))

        last_err = None
        for pack, single_buffer in attempts:
            tbl_buf = 1 if single_buffer else 2
            needed = (tbl_buf * table_bytes + 2 * (out_block_bytes + idx_block_bytes)
                      + onehot_bytes + (2 << 20))
            vmem_limit = int(min(usable_vmem, max(needed, 32 << 20)))
            try:
                out = _build_resident_call(
                    V=V, D=D, dtype=table.dtype, n_pad=n_pad, block_rows=block_rows,
                    use_onehot=use_onehot, pack=pack, single_buffer=single_buffer,
                    vmem_limit=vmem_limit, semantics=semantics,
                    table_bytes=table_bytes)(idx2d, table)
                if pack:
                    out = out.reshape(n_pad, D)
                return out[:N]
            except Exception as err:   # compile/lowering rejection -> next config
                last_err = err
        raise last_err

    # ---- large-table / small-gather path: leave the table in HBM ------------------
    # TODO(synk): a hand-rolled make_async_copy gather with a deep DMA-semaphore ring
    # (8-16 row DMAs in flight into a staging buffer) would hide more per-row latency.
    R = _HBM_ROWS_PER_STEP
    n_pad = pl.cdiv(N, R) * R
    idx = flat_idx
    if n_pad != N:
        idx = jnp.concatenate([idx, jnp.zeros((n_pad - N,), jnp.int32)])
    out = _build_hbm_row_gather_call(
        D=D, dtype=table.dtype, n_pad=n_pad, rows_per_step=R
    )(idx, *([table] * R))
    return out[:N]


# --------------------------------------------------------------------------- module


class ReFeaturesEmbedding:
    """JAX/Pallas port of torchfm.re.ReLayer.ReFeaturesEmbedding."""

    def __init__(self, field_dims, embed_dim, prefix, key):
        self.prefix = prefix
        self.embed_dim = embed_dim
        num_embeddings = int(sum(field_dims))

        # torch.nn.init.xavier_uniform_ on (num_embeddings, embed_dim):
        # uniform(-a, a), a = sqrt(6 / (V + D)).
        bound = float(np.sqrt(6.0 / (num_embeddings + embed_dim)))
        self.weight = jax.random.uniform(
            key, (num_embeddings, embed_dim),
            minval=-bound, maxval=bound, dtype=jnp.float32)

        offsets = np.array((0, *np.cumsum(field_dims)[:-1]), dtype=np.int64)
        self.prefix_offsets = jnp.asarray(offsets[:prefix], dtype=jnp.int32)
        self.rest_offsets = jnp.asarray(offsets[prefix:], dtype=jnp.int32)

    def __call__(self, x):
        prefix_index, rest_index = x

        # Offset addition is cheap glue (plain JAX); broadcasting matches torch:
        # (prefix_field,) + (1, prefix_field) -> (1, prefix_field)
        prefix_index = prefix_index.astype(jnp.int32) + self.prefix_offsets[None, :]
        # (batch, rest_field) + (1, rest_field) -> (batch, rest_field)
        rest_index = rest_index.astype(jnp.int32) + self.rest_offsets[None, :]

        D = self.embed_dim
        p_shape = prefix_index.shape
        r_shape = rest_index.shape
        n_prefix = int(np.prod(p_shape))

        # Fuse both gathers into a single pallas_call (one launch, one table fetch).
        flat_idx = jnp.concatenate(
            [prefix_index.reshape(-1), rest_index.reshape(-1)])
        emb = embedding_gather(self.weight, flat_idx)          # (n_total, D)

        prefix_emb = emb[:n_prefix].reshape(*p_shape, D)
        rest_emb = emb[n_prefix:].reshape(*r_shape, D)
        return prefix_emb, rest_emb


if __name__ == "__main__":
    key = jax.random.PRNGKey(0)
    k_w, k_p, k_r = jax.random.split(key, 3)

    # Small synthetic config consistent with the module's forward:
    field_dims = [10, 20, 30, 40]   # 4 fields, vocab = 100
    prefix = 2                      # first 2 fields are "prefix" fields
    embed_dim = 32
    batch = 2
    rest_fields = len(field_dims) - prefix

    model = ReFeaturesEmbedding(field_dims, embed_dim, prefix, k_w)

    # prefix_index: (prefix_field,)   values within each prefix field's cardinality
    prefix_index = jnp.array(
        [jax.random.randint(k_p, (), 0, field_dims[i]) for i in range(prefix)],
        dtype=jnp.int32)
    # rest_index: (batch, rest_field)
    rest_cards = jnp.asarray(field_dims[prefix:], dtype=jnp.int32)
    rest_index = (jax.random.randint(k_r, (batch, rest_fields), 0, 10 ** 6)
                  % rest_cards[None, :]).astype(jnp.int32)

    prefix_emb, rest_emb = model((prefix_index, rest_index))
    jax.block_until_ready((prefix_emb, rest_emb))

    # Cross-check against a pure-JAX reference of the same semantics.
    ref_prefix = model.weight[prefix_index[None, :] + model.prefix_offsets[None, :]]
    ref_rest = model.weight[rest_index + model.rest_offsets[None, :]]
    assert prefix_emb.shape == (1, prefix, embed_dim)
    assert rest_emb.shape == (batch, rest_fields, embed_dim)
    np.testing.assert_allclose(np.asarray(prefix_emb), np.asarray(ref_prefix),
                               rtol=1e-6, atol=1e-6)
    np.testing.assert_allclose(np.asarray(rest_emb), np.asarray(ref_rest),
                               rtol=1e-6, atol=1e-6)

    print("KERNEL_OK")
</pallas_src>

<mosaic_0001>
module attributes {stable_mosaic.version = 11 : i64} {
  func.func @_onehot_gather_kernel(%arg0: i32, %arg1: memref<256x1xi32, #tpu.memory_space<vmem>>, %arg2: memref<100x32xf32, #tpu.memory_space<vmem>>, %arg3: memref<64x128xf32, #tpu.memory_space<vmem>>) attributes {dimension_semantics = [#tpu.dimension_semantics<arbitrary>], iteration_bounds = array<i64: 1>, scalar_prefetch = 0 : i64, scratch_operands = 0 : i64, tpu.core_type = #tpu.core_type<tc>, window_params = [{transform_indices = @transform_0, window_bounds = array<i64: 256, 1>}, {pipeline_mode = #tpu.pipeline_mode<synchronous>, transform_indices = @transform_1, window_bounds = array<i64: 100, 32>}, {transform_indices = @transform_2, window_bounds = array<i64: 64, 128>}]} {
    %c0 = arith.constant 0 : index
    %c0_0 = arith.constant 0 : index
    %0 = vector.load %arg1[%c0, %c0_0] : memref<256x1xi32, #tpu.memory_space<vmem>>, vector<256x1xi32>
    %1 = tpu.iota {dimensions = array<i32: 1>} : vector<256x100xi32>
    %2 = vector.broadcast %0 : vector<256x1xi32> to vector<256x100xi32>
    %3 = arith.cmpi eq, %1, %2 : vector<256x100xi32>
    %4 = arith.extui %3 : vector<256x100xi1> to vector<256x100xi32>
    %5 = arith.sitofp %4 : vector<256x100xi32> to vector<256x100xf32>
    %c0_1 = arith.constant 0 : index
    %c0_2 = arith.constant 0 : index
    %6 = vector.load %arg2[%c0_1, %c0_2] : memref<100x32xf32, #tpu.memory_space<vmem>>, vector<100x32xf32>
    %cst = arith.constant dense<0.000000e+00> : vector<256x32xf32>
    %7 = tpu.matmul %5, %6, %cst {dimension_numbers = #tpu.dot_dimension_numbers<[1], [0], [0], [1], [0, 0, 1, 1], [], []>} : vector<256x100xf32>, vector<100x32xf32>, vector<256x32xf32> -> vector<256x32xf32>
    %8 = vector.shape_cast %7 : vector<256x32xf32> to vector<64x128xf32>
    %c0_3 = arith.constant 0 : index
    %c0_4 = arith.constant 0 : index
    %9 = vector.load %arg3[%c0_3, %c0_4] : memref<64x128xf32, #tpu.memory_space<vmem>>, vector<64x128xf32>
    tpu.vector_store %arg3[%c0_3, %c0_4], %8 {strides = array<i32>} : memref<64x128xf32, #tpu.memory_space<vmem>>, vector<64x128xf32>,
    return
  }
  func.func @transform_0(%arg0: i32) -> (i32, i32) {
    %c0_i32 = arith.constant 0 : i32
    %c0_i32_0 = arith.constant 0 : i32
    return %arg0, %c0_i32 : i32, i32
  }
  func.func @transform_1(%arg0: i32) -> (i32, i32) {
    %c0_i32 = arith.constant 0 : i32
    %c0_i32_0 = arith.constant 0 : i32
    %c0_i32_1 = arith.constant 0 : i32
    return %c0_i32, %c0_i32_0 : i32, i32
  }
  func.func @transform_2(%arg0: i32) -> (i32, i32) {
    %c0_i32 = arith.constant 0 : i32
    %c0_i32_0 = arith.constant 0 : i32
    return %arg0, %c0_i32 : i32, i32
  }
}

module attributes {stable_mosaic.version = 11 : i64} {
  func.func @_onehot_gather_kernel(%arg0: i32, %arg1: memref<256x1xi32, #tpu.memory_space<vmem>>, %arg2: memref<100x32xf32, #tpu.memory_space<vmem>>, %arg3: memref<256x32xf32, #tpu.memory_space<vmem>>) attributes {dimension_semantics = [#tpu.dimension_semantics<arbitrary>], iteration_bounds = array<i64: 1>, scalar_prefetch = 0 : i64, scratch_operands = 0 : i64, tpu.core_type = #tpu.core_type<tc>, window_params = [{transform_indices = @transform_0, window_bounds = array<i64: 256, 1>}, {pipeline_mode = #tpu.pipeline_mode<synchronous>, transform_indices = @transform_1, window_bounds = array<i64: 100, 32>}, {transform_indices = @transform_2, window_bounds = array<i64: 256, 32>}]} {
    %c0 = arith.constant 0 : index
    %c0_0 = arith.constant 0 : index
    %0 = vector.load %arg1[%c0, %c0_0] : memref<256x1xi32, #tpu.memory_space<vmem>>, vector<256x1xi32>
    %1 = tpu.iota {dimensions = array<i32: 1>} : vector<256x100xi32>
    %2 = vector.broadcast %0 : vector<256x1xi32> to vector<256x100xi32>
    %3 = arith.cmpi eq, %1, %2 : vector<256x100xi32>
    %4 = arith.extui %3 : vector<256x100xi1> to vector<256x100xi32>
    %5 = arith.sitofp %4 : vector<256x100xi32> to vector<256x100xf32>
    %c0_1 = arith.constant 0 : index
    %c0_2 = arith.constant 0 : index
    %6 = vector.load %arg2[%c0_1, %c0_2] : memref<100x32xf32, #tpu.memory_space<vmem>>, vector<100x32xf32>
    %cst = arith.constant dense<0.000000e+00> : vector<256x32xf32>
    %7 = tpu.matmul %5, %6, %cst {dimension_numbers = #tpu.dot_dimension_numbers<[1], [0], [0], [1], [0, 0, 1, 1], [], []>} : vector<256x100xf32>, vector<100x32xf32>, vector<256x32xf32> -> vector<256x32xf32>
    %c0_3 = arith.constant 0 : index
    %c0_4 = arith.constant 0 : index
    %8 = vector.load %arg3[%c0_3, %c0_4] : memref<256x32xf32, #tpu.memory_space<vmem>>, vector<256x32xf32>
    tpu.vector_store %arg3[%c0_3, %c0_4], %7 {strides = array<i32>} : memref<256x32xf32, #tpu.memory_space<vmem>>, vector<256x32xf32>,
    return
  }
  func.func @transform_0(%arg0: i32) -> (i32, i32) {
    %c0_i32 = arith.constant 0 : i32
    %c0_i32_0 = arith.constant 0 : i32
    return %arg0, %c0_i32 : i32, i32
  }
  func.func @transform_1(%arg0: i32) -> (i32, i32) {
    %c0_i32 = arith.constant 0 : i32
    %c0_i32_0 = arith.constant 0 : i32
    %c0_i32_1 = arith.constant 0 : i32
    return %c0_i32, %c0_i32_0 : i32, i32
  }
  func.func @transform_2(%arg0: i32) -> (i32, i32) {
    %c0_i32 = arith.constant 0 : i32
    %c0_i32_0 = arith.constant 0 : i32
    return %arg0, %c0_i32 : i32, i32
  }
}

module attributes {stable_mosaic.version = 11 : i64} {
  func.func @_onehot_gather_kernel(%arg0: i32, %arg1: memref<256x1xi32, #tpu.memory_space<vmem>>, %arg2: memref<100x32xf32, #tpu.memory_space<vmem>>, %arg3: memref<64x128xf32, #tpu.memory_space<vmem>>) attributes {dimension_semantics = [#tpu.dimension_semantics<arbitrary>], iteration_bounds = array<i64: 1>, scalar_prefetch = 0 : i64, scratch_operands = 0 : i64, tpu.core_type = #tpu.core_type<tc>, window_params = [{transform_indices = @transform_0, window_bounds = array<i64: 256, 1>}, {pipeline_mode = #tpu.pipeline_mode<synchronous>, transform_indices = @transform_1, window_bounds = array<i64: 100, 32>}, {transform_indices = @transform_2, window_bounds = array<i64: 64, 128>}]} {
    %c0 = arith.constant 0 : index
    %c0_0 = arith.constant 0 : index
    %0 = vector.load %arg1[%c0, %c0_0] : memref<256x1xi32, #tpu.memory_space<vmem>>, vector<256x1xi32>
    %1 = tpu.iota {dimensions = array<i32: 1>} : vector<256x100xi32>
    %2 = vector.broadcast %0 : vector<256x1xi32> to vector<256x100xi32>
    %3 = arith.cmpi eq, %1, %2 : vector<256x100xi32>
    %4 = arith.extui %3 : vector<256x100xi1> to vector<256x100xi32>
    %5 = arith.sitofp %4 : vector<256x100xi32> to vector<256x100xf32>
    %c0_1 = arith.constant 0 : index
    %c0_2 = arith.constant 0 : index
    %6 = vector.load %arg2[%c0_1, %c0_2] : memref<100x32xf32, #tpu.memory_space<vmem>>, vector<100x32xf32>
    %cst = arith.constant dense<0.000000e+00> : vector<256x32xf32>
    %7 = tpu.matmul %5, %6, %cst {dimension_numbers = #tpu.dot_dimension_numbers<[1], [0], [0], [1], [0, 0, 1, 1], [], []>} : vector<256x100xf32>, vector<100x32xf32>, vector<256x32xf32> -> vector<256x32xf32>
    %8 = vector.shape_cast %7 : vector<256x32xf32> to vector<64x128xf32>
    %c0_3 = arith.constant 0 : index
    %c0_4 = arith.constant 0 : index
    %9 = vector.load %arg3[%c0_3, %c0_4] : memref<64x128xf32, #tpu.memory_space<vmem>>, vector<64x128xf32>
    tpu.vector_store %arg3[%c0_3, %c0_4], %8 {strides = array<i32>} : memref<64x128xf32, #tpu.memory_space<vmem>>, vector<64x128xf32>,
    return
  }
  func.func @transform_0(%arg0: i32) -> (i32, i32) {
    %c0_i32 = arith.constant 0 : i32
    %c0_i32_0 = arith.constant 0 : i32
    return %arg0, %c0_i32 : i32, i32
  }
  func.func @transform_1(%arg0: i32) -> (i32, i32) {
    %c0_i32 = arith.constant 0 : i32
    %c0_i32_0 = arith.constant 0 : i32
    %c0_i32_1 = arith.constant 0 : i32
    return %c0_i32, %c0_i32_0 : i32, i32
  }
  func.func @transform_2(%arg0: i32) -> (i32, i32) {
    %c0_i32 = arith.constant 0 : i32
    %c0_i32_0 = arith.constant 0 : i32
    return %arg0, %c0_i32 : i32, i32
  }
}

module attributes {stable_mosaic.version = 11 : i64} {
  func.func @_onehot_gather_kernel(%arg0: i32, %arg1: memref<256x1xi32, #tpu.memory_space<vmem>>, %arg2: memref<100x32xf32, #tpu.memory_space<vmem>>, %arg3: memref<256x32xf32, #tpu.memory_space<vmem>>) attributes {dimension_semantics = [#tpu.dimension_semantics<arbitrary>], iteration_bounds = array<i64: 1>, scalar_prefetch = 0 : i64, scratch_operands = 0 : i64, tpu.core_type = #tpu.core_type<tc>, window_params = [{transform_indices = @transform_0, window_bounds = array<i64: 256, 1>}, {pipeline_mode = #tpu.pipeline_mode<synchronous>, transform_indices = @transform_1, window_bounds = array<i64: 100, 32>}, {transform_indices = @transform_2, window_bounds = array<i64: 256, 32>}]} {
    %c0 = arith.constant 0 : index
    %c0_0 = arith.constant 0 : index
    %0 = vector.load %arg1[%c0, %c0_0] : memref<256x1xi32, #tpu.memory_space<vmem>>, vector<256x1xi32>
    %1 = tpu.iota {dimensions = array<i32: 1>} : vector<256x100xi32>
    %2 = vector.broadcast %0 : vector<256x1xi32> to vector<256x100xi32>
    %3 = arith.cmpi eq, %1, %2 : vector<256x100xi32>
    %4 = arith.extui %3 : vector<256x100xi1> to vector<256x100xi32>
    %5 = arith.sitofp %4 : vector<256x100xi32> to vector<256x100xf32>
    %c0_1 = arith.constant 0 : index
    %c0_2 = arith.constant 0 : index
    %6 = vector.load %arg2[%c0_1, %c0_2] : memref<100x32xf32, #tpu.memory_space<vmem>>, vector<100x32xf32>
    %cst = arith.constant dense<0.000000e+00> : vector<256x32xf32>
    %7 = tpu.matmul %5, %6, %cst {dimension_numbers = #tpu.dot_dimension_numbers<[1], [0], [0], [1], [0, 0, 1, 1], [], []>} : vector<256x100xf32>, vector<100x32xf32>, vector<256x32xf32> -> vector<256x32xf32>
    %c0_3 = arith.constant 0 : index
    %c0_4 = arith.constant 0 : index
    %8 = vector.load %arg3[%c0_3, %c0_4] : memref<256x32xf32, #tpu.memory_space<vmem>>, vector<256x32xf32>
    tpu.vector_store %arg3[%c0_3, %c0_4], %7 {strides = array<i32>} : memref<256x32xf32, #tpu.memory_space<vmem>>, vector<256x32xf32>,
    return
  }
  func.func @transform_0(%arg0: i32) -> (i32, i32) {
    %c0_i32 = arith.constant 0 : i32
    %c0_i32_0 = arith.constant 0 : i32
    return %arg0, %c0_i32 : i32, i32
  }
  func.func @transform_1(%arg0: i32) -> (i32, i32) {
    %c0_i32 = arith.constant 0 : i32
    %c0_i32_0 = arith.constant 0 : i32
    %c0_i32_1 = arith.constant 0 : i32
    return %c0_i32, %c0_i32_0 : i32, i32
  }
  func.func @transform_2(%arg0: i32) -> (i32, i32) {
    %c0_i32 = arith.constant 0 : i32
    %c0_i32_0 = arith.constant 0 : i32
    return %arg0, %c0_i32 : i32, i32
  }
}

</mosaic_0001>

<bundles_post_ra>
// kernel: tpu_custom_call.1
= control target key start
LH: loop header
LB: loop body
LE: loop exit
PB: predicated region body
PF: predicated region fallthrough
CT: control target
= control target key end

     0   :  { %v827_v0 = vmov 0   ;;  %vm347_vm0 = vcmask 1043456   ;;  %v43_v46 = vlaneseq  ;;  %vm250_vm1 = vcmask 818176   ;;  %s1205_s0 = inlined_call_operand.vmem [shape: s32[256,1], index: 0, kind: input, shape index: {}]   ;;  %s1206_s1 = inlined_call_operand.vmem [shape: f32[100,32], index: 1, kind: input, shape index: {}]   ;;  %s1207_s2 = inlined_call_operand.vmem [shape: f32[256,32], index: 2, kind: output, shape index: {}]  }
   0x1   :  { %826 = vset.pattern.permute.xlu1 %v827_v0  ;;  %825 = vset.pattern.permute.xlu0 %v827_v0  ;;  %v12_v1 = vld [vmem:[%s1205_s0 + $0x8] sm:$0xff]  ;;  %v11_v2 = vld [vmem:[%s1205_s0] sm:$0xff]  ;;  %v29_v5 = vld [vmem:[%s1205_s0 + $0x90] sm:$0xff]  ;;  %v828_v50 = vmov 0.0  }
   0x2   :  { %49 = vperm.xlu1 %826, %v12_v1   ;;  %46 = vperm.xlu0 %825, %v11_v2   ;;  %v28_v3 = vld [vmem:[%s1205_s0 + $0x88] sm:$0xff]  ;;  %v27_v4 = vld [vmem:[%s1205_s0 + $0x80] sm:$0xff]  ;;  %v13_v6 = vld [vmem:[%s1205_s0 + $0x10] sm:$0xff]  ;;  %v979_v47 = vand.u32 127, %v43_v46 }
   0x3   :  { %v30_v7 = vld [vmem:[%s1205_s0 + $0x98] sm:$0xff]  ;;  %v249_v9 = vld [vmem:[%s1206_s1 + $0x60] sm:$0xf]  ;;  %v247_v11 = vld [vmem:[%s1206_s1 + $0x50] sm:$0xff] }
   0x4   :  { %v14_v8 = vld [vmem:[%s1205_s0 + $0x18] sm:$0xff]  ;;  %723 = vmatprep.subr.msk.mxu0 %vm347_vm0, %v249_v9  ;;  %797 = vmatprep.subr.msk.mxu1 %vm347_vm0, %v249_v9  ;;  %v31_v12 = vld [vmem:[%s1205_s0 + $0xa0] sm:$0xff]  ;;  %v246_v14 = vld [vmem:[%s1206_s1 + $0x48] sm:$0xff] }
   0x5   :  { %v248_v10 = vld [vmem:[%s1206_s1 + $0x58] sm:$0xff]  ;;  %724 = vmatpush3.msk.msra.mxu0 %vm347_vm0, %v249_v9  ;;  %810 = vmatpush3.msk.msra.mxu1 %vm347_vm0, %v249_v9  ;;  %v15_v13 = vld [vmem:[%s1205_s0 + $0x20] sm:$0xff]  ;;  %v32_v15 = vld [vmem:[%s1205_s0 + $0xa8] sm:$0xff] }
   0x6   :  { %97 = vperm.xlu1 %826, %v28_v3   ;;  %94 = vperm.xlu0 %825, %v27_v4   ;;  %v16_v16 = vld [vmem:[%s1205_s0 + $0x28] sm:$0xff]  ;;  %v245_v17 = vld [vmem:[%s1206_s1 + $0x40] sm:$0xff]  ;;  %v244_v18 = vld [vmem:[%s1206_s1 + $0x38] sm:$0xff] }
   0x7   :  { %725 = vmatprep.subr.mxu0 %v248_v10  ;;  %798 = vmatprep.subr.mxu1 %v248_v10  ;;  %v33_v19 = vld [vmem:[%s1205_s0 + $0xb0] sm:$0xff]  ;;  %v34_v22 = vld [vmem:[%s1205_s0 + $0xb8] sm:$0xff]  ;;  %v242_v24 = vld [vmem:[%s1206_s1 + $0x28] sm:$0xff] }
   0x8   :  { %726 = vmatpush3.msra.mxu0 %v248_v10  ;;  %811 = vmatpush3.msra.mxu1 %v248_v10  ;;  %v17_v20 = vld [vmem:[%s1205_s0 + $0x30] sm:$0xff]  ;;  %v18_v23 = vld [vmem:[%s1205_s0 + $0x38] sm:$0xff]  ;;  %v241_v25 = vld [vmem:[%s1206_s1 + $0x20] sm:$0xff] }
   0x9   :  { %727 = vmatprep.subr.mxu0 %v247_v11  ;;  %799 = vmatprep.subr.mxu1 %v247_v11  ;;  %v243_v21 = vld [vmem:[%s1206_s1 + $0x30] sm:$0xff]  ;;  %v35_v26 = vld [vmem:[%s1205_s0 + $0xc0] sm:$0xff]  ;;  %v240_v28 = vld [vmem:[%s1206_s1 + $0x18] sm:$0xff] }
   0xa   :  { %100 = vperm.xlu1 %826, %v29_v5   ;;  %52 = vperm.xlu0 %825, %v13_v6   ;;  %v19_v27 = vld [vmem:[%s1205_s0 + $0x40] sm:$0xff]  ;;  %v36_v29 = vld [vmem:[%s1205_s0 + $0xc8] sm:$0xff]  ;;  %v239_v31 = vld [vmem:[%s1206_s1 + $0x10] sm:$0xff] }
   0xb   :  { %728 = vmatpush3.msra.mxu0 %v247_v11  ;;  %812 = vmatpush3.msra.mxu1 %v247_v11  ;;  %v20_v30 = vld [vmem:[%s1205_s0 + $0x48] sm:$0xff]  ;;  %v37_v33 = vld [vmem:[%s1205_s0 + $0xd0] sm:$0xff]  ;;  %v237_v35 = vld [vmem:[%s1206_s1] sm:$0xff] }
   0xc   :  { %729 = vmatprep.subr.mxu0 %v246_v14  ;;  %800 = vmatprep.subr.mxu1 %v246_v14  ;;  %v238_v32 = vld [vmem:[%s1206_s1 + $0x8] sm:$0xff]  ;;  %v21_v34 = vld [vmem:[%s1205_s0 + $0x50] sm:$0xff]  ;;  %v38_v36 = vld [vmem:[%s1205_s0 + $0xd8] sm:$0xff] }
   0xd   :  { %730 = vmatpush3.msra.mxu0 %v246_v14  ;;  %813 = vmatpush3.msra.mxu1 %v246_v14  ;;  %v22_v37 = vld [vmem:[%s1205_s0 + $0x58] sm:$0xff]  ;;  %v39_v38 = vld [vmem:[%s1205_s0 + $0xe0] sm:$0xff]  ;;  %v40_v40 = vld [vmem:[%s1205_s0 + $0xe8] sm:$0xff] }
   0xe   :  { %103 = vperm.xlu1 %826, %v30_v7   ;;  %55 = vperm.xlu0 %825, %v14_v8   ;;  %v23_v39 = vld [vmem:[%s1205_s0 + $0x60] sm:$0xff]  ;;  %v24_v41 = vld [vmem:[%s1205_s0 + $0x68] sm:$0xff]  ;;  %v41_v42 = vld [vmem:[%s1205_s0 + $0xf0] sm:$0xff] }
   0xf   :  { %731 = vmatprep.subr.mxu0 %v245_v17  ;;  %801 = vmatprep.subr.mxu1 %v245_v17  ;;  %v25_v43 = vld [vmem:[%s1205_s0 + $0x70] sm:$0xff]  ;;  %v42_v44 = vld [vmem:[%s1205_s0 + $0xf8] sm:$0xff] }
  0x10   :  { %732 = vmatpush3.msra.mxu0 %v245_v17  ;;  %814 = vmatpush3.msra.mxu1 %v245_v17  ;;  %v26_v45 = vld [vmem:[%s1205_s0 + $0x78] sm:$0xff] }
  0x11   :  { %733 = vmatprep.subr.mxu0 %v244_v18  ;;  %802 = vmatprep.subr.mxu1 %v244_v18 }
  0x12   :  { %106 = vperm.xlu1 %826, %v31_v12   ;;  %58 = vperm.xlu0 %825, %v15_v13  }
  0x13   :  { %734 = vmatpush3.msra.mxu0 %v244_v18  ;;  %815 = vmatpush3.msra.mxu1 %v244_v18 }
  0x14   :  { %735 = vmatprep.subr.mxu0 %v243_v21  ;;  %803 = vmatprep.subr.mxu1 %v243_v21 }
  0x15   :  { %736 = vmatpush3.msra.mxu0 %v243_v21  ;;  %816 = vmatpush3.msra.mxu1 %v243_v21 }
  0x16   :  { %109 = vperm.xlu1 %826, %v32_v15   ;;  %61 = vperm.xlu0 %825, %v16_v16  }
  0x17   :  { %737 = vmatprep.subr.mxu0 %v242_v24  ;;  %804 = vmatprep.subr.mxu1 %v242_v24 }
  0x18   :  { %738 = vmatpush3.msra.mxu0 %v242_v24  ;;  %817 = vmatpush3.msra.mxu1 %v242_v24 }
  0x19   :  { %739 = vmatprep.subr.mxu0 %v241_v25  ;;  %805 = vmatprep.subr.mxu1 %v241_v25 }
  0x1a   :  { %112 = vperm.xlu1 %826, %v33_v19   ;;  %64 = vperm.xlu0 %825, %v17_v20  }
  0x1b   :  { %740 = vmatpush3.msra.mxu0 %v241_v25  ;;  %818 = vmatpush3.msra.mxu1 %v241_v25 }
  0x1c   :  { %741 = vmatprep.subr.mxu0 %v240_v28  ;;  %806 = vmatprep.subr.mxu1 %v240_v28 }
  0x1d   :  { %742 = vmatpush3.msra.mxu0 %v240_v28  ;;  %819 = vmatpush3.msra.mxu1 %v240_v28 }
  0x1e   :  { %115 = vperm.xlu1 %826, %v34_v22   ;;  %67 = vperm.xlu0 %825, %v18_v23  }
  0x1f   :  { %743 = vmatprep.subr.mxu0 %v239_v31  ;;  %807 = vmatprep.subr.mxu1 %v239_v31 }
  0x20   :  { %744 = vmatpush3.msra.mxu0 %v239_v31  ;;  %820 = vmatpush3.msra.mxu1 %v239_v31 }
  0x21   :  { %745 = vmatprep.subr.mxu0 %v238_v32  ;;  %808 = vmatprep.subr.mxu1 %v238_v32 }
  0x22   :  { %118 = vperm.xlu1 %826, %v35_v26   ;;  %70 = vperm.xlu0 %825, %v19_v27  }
  0x23   :  { %746 = vmatpush3.msra.mxu0 %v238_v32  ;;  %821 = vmatpush3.msra.mxu1 %v238_v32 }
  0x24   :  { %747 = vmatprep.subr.mxu0 %v237_v35  ;;  %809 = vmatprep.subr.mxu1 %v237_v35 }
  0x25   :  { %748 = vmatpush3.msra.mxu0 %v237_v35  ;;  %822 = vmatpush3.msra.mxu1 %v237_v35 }
  0x26   :  { %121 = vperm.xlu1 %826, %v36_v29   ;;  %73 = vperm.xlu0 %825, %v20_v30  }
  0x2a   :  { %124 = vperm.xlu1 %826, %v37_v33   ;;  %76 = vperm.xlu0 %825, %v21_v34  }
  0x2e   :  { %127 = vperm.xlu1 %826, %v38_v36   ;;  %79 = vperm.xlu0 %825, %v22_v37  }
  0x32   :  { %130 = vperm.xlu1 %826, %v39_v38   ;;  %82 = vperm.xlu0 %825, %v23_v39  }
  0x36   :  { %133 = vperm.xlu1 %826, %v40_v40   ;;  %85 = vperm.xlu0 %825, %v24_v41  }
  0x3a   :  { %136 = vperm.xlu1 %826, %v41_v42   ;;  %88 = vperm.xlu0 %825, %v25_v43  }
  0x3e   :  { %139 = vperm.xlu1 %826, %v42_v44   ;;  %91 = vperm.xlu0 %825, %v26_v45  }
  0x7d   :  { %v50_v48 = vpop.permute.xlu1 %49  ;;  %v47_v49 = vpop.permute.xlu0 %46 }
  0x7e   :  { %vm142_vm2 = vcmp.eq.s32.totalorder %v979_v47, %v50_v48  ;;  %vm141_vm3 = vcmp.eq.s32.totalorder %v979_v47, %v47_v49 }
  0x7f   :  { %v614_v51 = vsel %vm142_vm2, 1.0, %v828_v50  ;;  %v613_v52 = vsel %vm141_vm3, 1.0, %v828_v50 }
  0x80   :  { %749 = vmatprep.mubr.msk.f32.mxu0 %vm250_vm1, %v613_v52 }
  0x81   :  { %v98_v53 = vpop.permute.xlu1 %97  ;;  %750 = vmatmul.mubr.msk.f32.vlgmr.msra.gmra.mxu0 %vm250_vm1, %v614_v51  ;;  %v95_v54 = vpop.permute.xlu0 %94 }
  0x82   :  { %vm158_vm4 = vcmp.eq.s32.totalorder %v979_v47, %v98_v53  ;;  %vm157_vm5 = vcmp.eq.s32.totalorder %v979_v47, %v95_v54 }
  0x83   :  { %v630_v55 = vsel %vm158_vm4, 1.0, %v828_v50  ;;  %v629_v56 = vsel %vm157_vm5, 1.0, %v828_v50 }
  0x84   :  { %773 = vmatprep.mubr.msk.f32.mxu1 %vm250_vm1, %v629_v56 }
  0x85   :  { %v101_v57 = vpop.permute.xlu1 %100  ;;  %774 = vmatmul.mubr.msk.f32.vlgmr.msra.gmra.mxu1 %vm250_vm1, %v630_v55  ;;  %v53_v58 = vpop.permute.xlu0 %52 }
  0x86   :  { %vm159_vm6 = vcmp.eq.s32.totalorder %v979_v47, %v101_v57  ;;  %vm143_vm7 = vcmp.eq.s32.totalorder %v979_v47, %v53_v58 }
  0x87   :  { %v631_v59 = vsel %vm159_vm6, 1.0, %v828_v50  ;;  %v615_v60 = vsel %vm143_vm7, 1.0, %v828_v50 }
  0x88   :  { %752 = vmatprep.mubr.msk.f32.mxu0 %vm250_vm1, %v615_v60  ;;  %776 = vmatprep.mubr.msk.f32.mxu1 %vm250_vm1, %v631_v59 }
  0x89   :  { %v104_v61 = vpop.permute.xlu1 %103  ;;  %v56_v62 = vpop.permute.xlu0 %55 }
  0x8a   :  { %vm160_vm8 = vcmp.eq.s32.totalorder %v979_v47, %v104_v61  ;;  %vm144_vm9 = vcmp.eq.s32.totalorder %v979_v47, %v56_v62 }
  0x8b   :  { %v632_v63 = vsel %vm160_vm8, 1.0, %v828_v50  ;;  %v616_v0 = vsel %vm144_vm9, 1.0, %v828_v50 }
  0x8c   :  { %753 = vmatmul.mubr.msk.f32.gmra.mxu0 %vm250_vm1, %v616_v0  ;;  %777 = vmatmul.mubr.msk.f32.gmra.mxu1 %vm250_vm1, %v632_v63 }
  0x8d   :  { %v107_v1 = vpop.permute.xlu1 %106  ;;  %v59_v2 = vpop.permute.xlu0 %58 }
  0x8e   :  { %vm161_vm10 = vcmp.eq.s32.totalorder %v979_v47, %v107_v1  ;;  %vm145_vm11 = vcmp.eq.s32.totalorder %v979_v47, %v59_v2 }
  0x8f   :  { %v633_v3 = vsel %vm161_vm10, 1.0, %v828_v50  ;;  %v617_v4 = vsel %vm145_vm11, 1.0, %v828_v50 }
  0x90   :  { %755 = vmatprep.mubr.msk.f32.mxu0 %vm250_vm1, %v617_v4  ;;  %779 = vmatprep.mubr.msk.f32.mxu1 %vm250_vm1, %v633_v3 }
  0x91   :  { %v110_v5 = vpop.permute.xlu1 %109  ;;  %v62_v6 = vpop.permute.xlu0 %61 }
  0x92   :  { %vm162_vm12 = vcmp.eq.s32.totalorder %v979_v47, %v110_v5  ;;  %vm146_vm13 = vcmp.eq.s32.totalorder %v979_v47, %v62_v6 }
  0x93   :  { %v634_v7 = vsel %vm162_vm12, 1.0, %v828_v50  ;;  %v618_v8 = vsel %vm146_vm13, 1.0, %v828_v50 }
  0x94   :  { %756 = vmatmul.mubr.msk.f32.gmra.mxu0 %vm250_vm1, %v618_v8  ;;  %780 = vmatmul.mubr.msk.f32.gmra.mxu1 %vm250_vm1, %v634_v7 }
  0x95   :  { %v113_v9 = vpop.permute.xlu1 %112  ;;  %v65_v10 = vpop.permute.xlu0 %64 }
  0x96   :  { %vm163_vm14 = vcmp.eq.s32.totalorder %v979_v47, %v113_v9  ;;  %vm147_vm15 = vcmp.eq.s32.totalorder %v979_v47, %v65_v10 }
  0x97   :  { %v635_v11 = vsel %vm163_vm14, 1.0, %v828_v50  ;;  %v619_v12 = vsel %vm147_vm15, 1.0, %v828_v50 }
  0x98   :  { %758 = vmatprep.mubr.msk.f32.mxu0 %vm250_vm1, %v619_v12  ;;  %782 = vmatprep.mubr.msk.f32.mxu1 %vm250_vm1, %v635_v11 }
  0x99   :  { %v116_v13 = vpop.permute.xlu1 %115  ;;  %v68_v14 = vpop.permute.xlu0 %67 }
  0x9a   :  { %vm164_vm0 = vcmp.eq.s32.totalorder %v979_v47, %v116_v13  ;;  %vm148_vm2 = vcmp.eq.s32.totalorder %v979_v47, %v68_v14 }
  0x9b   :  { %v636_v15 = vsel %vm164_vm0, 1.0, %v828_v50  ;;  %v620_v16 = vsel %vm148_vm2, 1.0, %v828_v50 }
  0x9c   :  { %759 = vmatmul.mubr.msk.f32.gmra.mxu0 %vm250_vm1, %v620_v16  ;;  %783 = vmatmul.mubr.msk.f32.gmra.mxu1 %vm250_vm1, %v636_v15 }
  0x9d   :  { %v119_v17 = vpop.permute.xlu1 %118  ;;  %v71_v18 = vpop.permute.xlu0 %70 }
  0x9e   :  { %vm165_vm3 = vcmp.eq.s32.totalorder %v979_v47, %v119_v17  ;;  %vm149_vm4 = vcmp.eq.s32.totalorder %v979_v47, %v71_v18 }
  0x9f   :  { %v637_v19 = vsel %vm165_vm3, 1.0, %v828_v50  ;;  %v621_v20 = vsel %vm149_vm4, 1.0, %v828_v50  ;;  %vm576_vm4 = vcmask 261120  }
  0xa0   :  { %761 = vmatprep.mubr.msk.f32.mxu0 %vm250_vm1, %v621_v20  ;;  %785 = vmatprep.mubr.msk.f32.mxu1 %vm250_vm1, %v637_v19 }
  0xa1   :  { %v122_v21 = vpop.permute.xlu1 %121  ;;  %v74_v22 = vpop.permute.xlu0 %73 }
  0xa2   :  { %vm166_vm5 = vcmp.eq.s32.totalorder %v979_v47, %v122_v21  ;;  %vm150_vm6 = vcmp.eq.s32.totalorder %v979_v47, %v74_v22 }
  0xa3   :  { %v638_v23 = vsel %vm166_vm5, 1.0, %v828_v50  ;;  %v622_v24 = vsel %vm150_vm6, 1.0, %v828_v50 }
  0xa4   :  { %762 = vmatmul.mubr.msk.f32.gmra.mxu0 %vm250_vm1, %v622_v24  ;;  %786 = vmatmul.mubr.msk.f32.gmra.mxu1 %vm250_vm1, %v638_v23 }
  0xa5   :  { %v125_v25 = vpop.permute.xlu1 %124  ;;  %v77_v26 = vpop.permute.xlu0 %76 }
  0xa6   :  { %vm167_vm7 = vcmp.eq.s32.totalorder %v979_v47, %v125_v25  ;;  %vm151_vm8 = vcmp.eq.s32.totalorder %v979_v47, %v77_v26 }
  0xa7   :  { %v639_v27 = vsel %vm167_vm7, 1.0, %v828_v50  ;;  %v623_v28 = vsel %vm151_vm8, 1.0, %v828_v50 }
  0xa8   :  { %764 = vmatprep.mubr.msk.f32.mxu0 %vm250_vm1, %v623_v28  ;;  %788 = vmatprep.mubr.msk.f32.mxu1 %vm250_vm1, %v639_v27 }
  0xa9   :  { %v128_v29 = vpop.permute.xlu1 %127  ;;  %v80_v30 = vpop.permute.xlu0 %79 }
  0xaa   :  { %vm168_vm9 = vcmp.eq.s32.totalorder %v979_v47, %v128_v29  ;;  %vm152_vm10 = vcmp.eq.s32.totalorder %v979_v47, %v80_v30 }
  0xab   :  { %v640_v31 = vsel %vm168_vm9, 1.0, %v828_v50  ;;  %v624_v32 = vsel %vm152_vm10, 1.0, %v828_v50 }
  0xac   :  { %765 = vmatmul.mubr.msk.f32.gmra.mxu0 %vm250_vm1, %v624_v32  ;;  %789 = vmatmul.mubr.msk.f32.gmra.mxu1 %vm250_vm1, %v640_v31 }
  0xad   :  { %v131_v33 = vpop.permute.xlu1 %130  ;;  %v83_v34 = vpop.permute.xlu0 %82 }
  0xae   :  { %vm169_vm11 = vcmp.eq.s32.totalorder %v979_v47, %v131_v33  ;;  %vm153_vm12 = vcmp.eq.s32.totalorder %v979_v47, %v83_v34 }
  0xaf   :  { %v641_v35 = vsel %vm169_vm11, 1.0, %v828_v50  ;;  %v625_v36 = vsel %vm153_vm12, 1.0, %v828_v50 }
  0xb0   :  { %767 = vmatprep.mubr.msk.f32.mxu0 %vm250_vm1, %v625_v36  ;;  %791 = vmatprep.mubr.msk.f32.mxu1 %vm250_vm1, %v641_v35 }
  0xb1   :  { %v134_v37 = vpop.permute.xlu1 %133  ;;  %v86_v38 = vpop.permute.xlu0 %85 }
  0xb2   :  { %vm170_vm13 = vcmp.eq.s32.totalorder %v979_v47, %v134_v37  ;;  %vm154_vm14 = vcmp.eq.s32.totalorder %v979_v47, %v86_v38 }
  0xb3   :  { %v642_v39 = vsel %vm170_vm13, 1.0, %v828_v50  ;;  %v626_v40 = vsel %vm154_vm14, 1.0, %v828_v50 }
  0xb4   :  { %768 = vmatmul.mubr.msk.f32.gmra.mxu0 %vm250_vm1, %v626_v40  ;;  %792 = vmatmul.mubr.msk.f32.gmra.mxu1 %vm250_vm1, %v642_v39 }
  0xb5   :  { %v137_v41 = vpop.permute.xlu1 %136  ;;  %v89_v42 = vpop.permute.xlu0 %88 }
  0xb6   :  { %vm171_vm15 = vcmp.eq.s32.totalorder %v979_v47, %v137_v41  ;;  %vm155_vm0 = vcmp.eq.s32.totalorder %v979_v47, %v89_v42 }
  0xb7   :  { %v643_v43 = vsel %vm171_vm15, 1.0, %v828_v50  ;;  %v627_v44 = vsel %vm155_vm0, 1.0, %v828_v50 }
  0xb8   :  { %770 = vmatprep.mubr.msk.f32.mxu0 %vm250_vm1, %v627_v44  ;;  %794 = vmatprep.mubr.msk.f32.mxu1 %vm250_vm1, %v643_v43 }
  0xb9   :  { %v140_v45 = vpop.permute.xlu1 %139  ;;  %v92_v46 = vpop.permute.xlu0 %91 }
  0xba   :  { %vm172_vm2 = vcmp.eq.s32.totalorder %v979_v47, %v140_v45  ;;  %vm156_vm3 = vcmp.eq.s32.totalorder %v979_v47, %v92_v46 }
  0xbb   :  { %v644_v48 = vsel %vm172_vm2, 1.0, %v828_v50  ;;  %v628_v49 = vsel %vm156_vm3, 1.0, %v828_v50 }
  0xbc   :  { %771 = vmatmul.mubr.msk.f32.gmra.mxu0 %vm250_vm1, %v628_v49  ;;  %795 = vmatmul.mubr.msk.f32.gmra.mxu1 %vm250_vm1, %v644_v48 }
 0x141   :  { %v751_v51 = vpop.f32.mrf.mxu0 }
 0x142   :  { %578 = vst.msk [vmem:[%s1207_s2 + $0x8] sm:$0xff] %vm576_vm4, %v751_v51 }
 0x143   :  { %v417_v52 = vpop.f32.mrf.mxu0 }
 0x144   :  { %577 = vst.msk [vmem:[%s1207_s2] sm:$0xff] %vm576_vm4, %v417_v52 }
 0x145   :  { %v775_v47 = vpop.f32.mrf.mxu1 }
 0x146   :  { %594 = vst.msk [vmem:[%s1207_s2 + $0x88] sm:$0xff] %vm576_vm4, %v775_v47 }
 0x147   :  { %v497_v50 = vpop.f32.mrf.mxu1 }
 0x148   :  { %593 = vst.msk [vmem:[%s1207_s2 + $0x80] sm:$0xff] %vm576_vm4, %v497_v50 }
 0x14c   :  { %v754_v53 = vpop.f32.mrf.mxu0  ;;  %v778_v54 = vpop.f32.mrf.mxu1 }
 0x14d   :  { %580 = vst.msk [vmem:[%s1207_s2 + $0x18] sm:$0xff] %vm576_vm4, %v754_v53  ;;  %596 = vst.msk [vmem:[%s1207_s2 + $0x98] sm:$0xff] %vm576_vm4, %v778_v54 }
 0x14e   :  { %v427_v55 = vpop.f32.mrf.mxu0  ;;  %v507_v56 = vpop.f32.mrf.mxu1 }
 0x14f   :  { %579 = vst.msk [vmem:[%s1207_s2 + $0x10] sm:$0xff] %vm576_vm4, %v427_v55  ;;  %595 = vst.msk [vmem:[%s1207_s2 + $0x90] sm:$0xff] %vm576_vm4, %v507_v56 }
 0x154   :  { %v757_v57 = vpop.f32.mrf.mxu0  ;;  %v781_v58 = vpop.f32.mrf.mxu1 }
 0x155   :  { %582 = vst.msk [vmem:[%s1207_s2 + $0x28] sm:$0xff] %vm576_vm4, %v757_v57  ;;  %598 = vst.msk [vmem:[%s1207_s2 + $0xa8] sm:$0xff] %vm576_vm4, %v781_v58 }
 0x156   :  { %v437_v59 = vpop.f32.mrf.mxu0  ;;  %v517_v60 = vpop.f32.mrf.mxu1 }
 0x157   :  { %581 = vst.msk [vmem:[%s1207_s2 + $0x20] sm:$0xff] %vm576_vm4, %v437_v59  ;;  %597 = vst.msk [vmem:[%s1207_s2 + $0xa0] sm:$0xff] %vm576_vm4, %v517_v60 }
 0x15c   :  { %v760_v61 = vpop.f32.mrf.mxu0  ;;  %v784_v62 = vpop.f32.mrf.mxu1 }
 0x15d   :  { %584 = vst.msk [vmem:[%s1207_s2 + $0x38] sm:$0xff] %vm576_vm4, %v760_v61  ;;  %600 = vst.msk [vmem:[%s1207_s2 + $0xb8] sm:$0xff] %vm576_vm4, %v784_v62 }
 0x15e   :  { %v447_v63 = vpop.f32.mrf.mxu0  ;;  %v527_v0 = vpop.f32.mrf.mxu1 }
 0x15f   :  { %583 = vst.msk [vmem:[%s1207_s2 + $0x30] sm:$0xff] %vm576_vm4, %v447_v63  ;;  %599 = vst.msk [vmem:[%s1207_s2 + $0xb0] sm:$0xff] %vm576_vm4, %v527_v0 }
 0x164   :  { %v763_v1 = vpop.f32.mrf.mxu0  ;;  %v787_v2 = vpop.f32.mrf.mxu1 }
 0x165   :  { %586 = vst.msk [vmem:[%s1207_s2 + $0x48] sm:$0xff] %vm576_vm4, %v763_v1  ;;  %602 = vst.msk [vmem:[%s1207_s2 + $0xc8] sm:$0xff] %vm576_vm4, %v787_v2 }
 0x166   :  { %v457_v3 = vpop.f32.mrf.mxu0  ;;  %v537_v4 = vpop.f32.mrf.mxu1 }
 0x167   :  { %585 = vst.msk [vmem:[%s1207_s2 + $0x40] sm:$0xff] %vm576_vm4, %v457_v3  ;;  %601 = vst.msk [vmem:[%s1207_s2 + $0xc0] sm:$0xff] %vm576_vm4, %v537_v4 }
 0x16c   :  { %v766_v5 = vpop.f32.mrf.mxu0  ;;  %v790_v6 = vpop.f32.mrf.mxu1 }
 0x16d   :  { %588 = vst.msk [vmem:[%s1207_s2 + $0x58] sm:$0xff] %vm576_vm4, %v766_v5  ;;  %604 = vst.msk [vmem:[%s1207_s2 + $0xd8] sm:$0xff] %vm576_vm4, %v790_v6 }
 0x16e   :  { %v467_v7 = vpop.f32.mrf.mxu0  ;;  %v547_v8 = vpop.f32.mrf.mxu1 }
 0x16f   :  { %587 = vst.msk [vmem:[%s1207_s2 + $0x50] sm:$0xff] %vm576_vm4, %v467_v7  ;;  %603 = vst.msk [vmem:[%s1207_s2 + $0xd0] sm:$0xff] %vm576_vm4, %v547_v8 }
 0x174   :  { %v769_v9 = vpop.f32.mrf.mxu0  ;;  %v793_v10 = vpop.f32.mrf.mxu1 }
 0x175   :  { %590 = vst.msk [vmem:[%s1207_s2 + $0x68] sm:$0xff] %vm576_vm4, %v769_v9  ;;  %606 = vst.msk [vmem:[%s1207_s2 + $0xe8] sm:$0xff] %vm576_vm4, %v793_v10 }
 0x176   :  { %v477_v11 = vpop.f32.mrf.mxu0  ;;  %v557_v12 = vpop.f32.mrf.mxu1 }
 0x177   :  { %589 = vst.msk [vmem:[%s1207_s2 + $0x60] sm:$0xff] %vm576_vm4, %v477_v11  ;;  %605 = vst.msk [vmem:[%s1207_s2 + $0xe0] sm:$0xff] %vm576_vm4, %v557_v12 }
 0x17c   :  { %v772_v13 = vpop.f32.mrf.mxu0  ;;  %v796_v14 = vpop.f32.mrf.mxu1 }
 0x17d   :  { %592 = vst.msk [vmem:[%s1207_s2 + $0x78] sm:$0xff] %vm576_vm4, %v772_v13  ;;  %608 = vst.msk [vmem:[%s1207_s2 + $0xf8] sm:$0xff] %vm576_vm4, %v796_v14 }
 0x17e   :  { %v487_v15 = vpop.f32.mrf.mxu0  ;;  %v567_v16 = vpop.f32.mrf.mxu1 }
 0x17f   :  { %591 = vst.msk [vmem:[%s1207_s2 + $0x70] sm:$0xff] %vm576_vm4, %v487_v15  ;;  %607 = vst.msk [vmem:[%s1207_s2 + $0xf0] sm:$0xff] %vm576_vm4, %v567_v16 }

// kernel: tpu_custom_call.1
= control target key start
LH: loop header
LB: loop body
LE: loop exit
PB: predicated region body
PF: predicated region fallthrough
CT: control target
= control target key end

     0   :  { %v827_v0 = vmov 0   ;;  %vm347_vm0 = vcmask 1043456   ;;  %v43_v46 = vlaneseq  ;;  %vm250_vm1 = vcmask 818176   ;;  %s1205_s0 = inlined_call_operand.vmem [shape: s32[256,1], index: 0, kind: input, shape index: {}]   ;;  %s1206_s1 = inlined_call_operand.vmem [shape: f32[100,32], index: 1, kind: input, shape index: {}]   ;;  %s1207_s2 = inlined_call_operand.vmem [shape: f32[256,32], index: 2, kind: output, shape index: {}]  }
   0x1   :  { %826 = vset.pattern.permute.xlu1 %v827_v0  ;;  %825 = vset.pattern.permute.xlu0 %v827_v0  ;;  %v12_v1 = vld [vmem:[%s1205_s0 + $0x8] sm:$0xff]  ;;  %v11_v2 = vld [vmem:[%s1205_s0] sm:$0xff]  ;;  %v29_v5 = vld [vmem:[%s1205_s0 + $0x90] sm:$0xff]  ;;  %v828_v50 = vmov 0.0  }
   0x2   :  { %49 = vperm.xlu1 %826, %v12_v1   ;;  %46 = vperm.xlu0 %825, %v11_v2   ;;  %v28_v3 = vld [vmem:[%s1205_s0 + $0x88] sm:$0xff]  ;;  %v27_v4 = vld [vmem:[%s1205_s0 + $0x80] sm:$0xff]  ;;  %v13_v6 = vld [vmem:[%s1205_s0 + $0x10] sm:$0xff]  ;;  %v979_v47 = vand.u32 127, %v43_v46 }
   0x3   :  { %v30_v7 = vld [vmem:[%s1205_s0 + $0x98] sm:$0xff]  ;;  %v249_v9 = vld [vmem:[%s1206_s1 + $0x60] sm:$0xf]  ;;  %v247_v11 = vld [vmem:[%s1206_s1 + $0x50] sm:$0xff] }
   0x4   :  { %v14_v8 = vld [vmem:[%s1205_s0 + $0x18] sm:$0xff]  ;;  %723 = vmatprep.subr.msk.mxu0 %vm347_vm0, %v249_v9  ;;  %797 = vmatprep.subr.msk.mxu1 %vm347_vm0, %v249_v9  ;;  %v31_v12 = vld [vmem:[%s1205_s0 + $0xa0] sm:$0xff]  ;;  %v246_v14 = vld [vmem:[%s1206_s1 + $0x48] sm:$0xff] }
   0x5   :  { %v248_v10 = vld [vmem:[%s1206_s1 + $0x58] sm:$0xff]  ;;  %724 = vmatpush3.msk.msra.mxu0 %vm347_vm0, %v249_v9  ;;  %810 = vmatpush3.msk.msra.mxu1 %vm347_vm0, %v249_v9  ;;  %v15_v13 = vld [vmem:[%s1205_s0 + $0x20] sm:$0xff]  ;;  %v32_v15 = vld [vmem:[%s1205_s0 + $0xa8] sm:$0xff] }
   0x6   :  { %97 = vperm.xlu1 %826, %v28_v3   ;;  %94 = vperm.xlu0 %825, %v27_v4   ;;  %v16_v16 = vld [vmem:[%s1205_s0 + $0x28] sm:$0xff]  ;;  %v245_v17 = vld [vmem:[%s1206_s1 + $0x40] sm:$0xff]  ;;  %v244_v18 = vld [vmem:[%s1206_s1 + $0x38] sm:$0xff] }
   0x7   :  { %725 = vmatprep.subr.mxu0 %v248_v10  ;;  %798 = vmatprep.subr.mxu1 %v248_v10  ;;  %v33_v19 = vld [vmem:[%s1205_s0 + $0xb0] sm:$0xff]  ;;  %v34_v22 = vld [vmem:[%s1205_s0 + $0xb8] sm:$0xff]  ;;  %v242_v24 = vld [vmem:[%s1206_s1 + $0x28] sm:$0xff] }
   0x8   :  { %726 = vmatpush3.msra.mxu0 %v248_v10  ;;  %811 = vmatpush3.msra.mxu1 %v248_v10  ;;  %v17_v20 = vld [vmem:[%s1205_s0 + $0x30] sm:$0xff]  ;;  %v18_v23 = vld [vmem:[%s1205_s0 + $0x38] sm:$0xff]  ;;  %v241_v25 = vld [vmem:[%s1206_s1 + $0x20] sm:$0xff] }
   0x9   :  { %727 = vmatprep.subr.mxu0 %v247_v11  ;;  %799 = vmatprep.subr.mxu1 %v247_v11  ;;  %v243_v21 = vld [vmem:[%s1206_s1 + $0x30] sm:$0xff]  ;;  %v35_v26 = vld [vmem:[%s1205_s0 + $0xc0] sm:$0xff]  ;;  %v240_v28 = vld [vmem:[%s1206_s1 + $0x18] sm:$0xff] }
   0xa   :  { %100 = vperm.xlu1 %826, %v29_v5   ;;  %52 = vperm.xlu0 %825, %v13_v6   ;;  %v19_v27 = vld [vmem:[%s1205_s0 + $0x40] sm:$0xff]  ;;  %v36_v29 = vld [vmem:[%s1205_s0 + $0xc8] sm:$0xff]  ;;  %v239_v31 = vld [vmem:[%s1206_s1 + $0x10] sm:$0xff] }
   0xb   :  { %728 = vmatpush3.msra.mxu0 %v247_v11  ;;  %812 = vmatpush3.msra.mxu1 %v247_v11  ;;  %v20_v30 = vld [vmem:[%s1205_s0 + $0x48] sm:$0xff]  ;;  %v37_v33 = vld [vmem:[%s1205_s0 + $0xd0] sm:$0xff]  ;;  %v237_v35 = vld [vmem:[%s1206_s1] sm:$0xff] }
   0xc   :  { %729 = vmatprep.subr.mxu0 %v246_v14  ;;  %800 = vmatprep.subr.mxu1 %v246_v14  ;;  %v238_v32 = vld [vmem:[%s1206_s1 + $0x8] sm:$0xff]  ;;  %v21_v34 = vld [vmem:[%s1205_s0 + $0x50] sm:$0xff]  ;;  %v38_v36 = vld [vmem:[%s1205_s0 + $0xd8] sm:$0xff] }
   0xd   :  { %730 = vmatpush3.msra.mxu0 %v246_v14  ;;  %813 = vmatpush3.msra.mxu1 %v246_v14  ;;  %v22_v37 = vld [vmem:[%s1205_s0 + $0x58] sm:$0xff]  ;;  %v39_v38 = vld [vmem:[%s1205_s0 + $0xe0] sm:$0xff]  ;;  %v40_v40 = vld [vmem:[%s1205_s0 + $0xe8] sm:$0xff] }
   0xe   :  { %103 = vperm.xlu1 %826, %v30_v7   ;;  %55 = vperm.xlu0 %825, %v14_v8   ;;  %v23_v39 = vld [vmem:[%s1205_s0 + $0x60] sm:$0xff]  ;;  %v24_v41 = vld [vmem:[%s1205_s0 + $0x68] sm:$0xff]  ;;  %v41_v42 = vld [vmem:[%s1205_s0 + $0xf0] sm:$0xff] }
   0xf   :  { %731 = vmatprep.subr.mxu0 %v245_v17  ;;  %801 = vmatprep.subr.mxu1 %v245_v17  ;;  %v25_v43 = vld [vmem:[%s1205_s0 + $0x70] sm:$0xff]  ;;  %v42_v44 = vld [vmem:[%s1205_s0 + $0xf8] sm:$0xff] }
  0x10   :  { %732 = vmatpush3.msra.mxu0 %v245_v17  ;;  %814 = vmatpush3.msra.mxu1 %v245_v17  ;;  %v26_v45 = vld [vmem:[%s1205_s0 + $0x78] sm:$0xff] }
  0x11   :  { %733 = vmatprep.subr.mxu0 %v244_v18  ;;  %802 = vmatprep.subr.mxu1 %v244_v18 }
  0x12   :  { %106 = vperm.xlu1 %826, %v31_v12   ;;  %58 = vperm.xlu0 %825, %v15_v13  }
  0x13   :  { %734 = vmatpush3.msra.mxu0 %v244_v18  ;;  %815 = vmatpush3.msra.mxu1 %v244_v18 }
  0x14   :  { %735 = vmatprep.subr.mxu0 %v243_v21  ;;  %803 = vmatprep.subr.mxu1 %v243_v21 }
  0x15   :  { %736 = vmatpush3.msra.mxu0 %v243_v21  ;;  %816 = vmatpush3.msra.mxu1 %v243_v21 }
  0x16   :  { %109 = vperm.xlu1 %826, %v32_v15   ;;  %61 = vperm.xlu0 %825, %v16_v16  }
  0x17   :  { %737 = vmatprep.subr.mxu0 %v242_v24  ;;  %804 = vmatprep.subr.mxu1 %v242_v24 }
  0x18   :  { %738 = vmatpush3.msra.mxu0 %v242_v24  ;;  %817 = vmatpush3.msra.mxu1 %v242_v24 }
  0x19   :  { %739 = vmatprep.subr.mxu0 %v241_v25  ;;  %805 = vmatprep.subr.mxu1 %v241_v25 }
  0x1a   :  { %112 = vperm.xlu1 %826, %v33_v19   ;;  %64 = vperm.xlu0 %825, %v17_v20  }
  0x1b   :  { %740 = vmatpush3.msra.mxu0 %v241_v25  ;;  %818 = vmatpush3.msra.mxu1 %v241_v25 }
  0x1c   :  { %741 = vmatprep.subr.mxu0 %v240_v28  ;;  %806 = vmatprep.subr.mxu1 %v240_v28 }
  0x1d   :  { %742 = vmatpush3.msra.mxu0 %v240_v28  ;;  %819 = vmatpush3.msra.mxu1 %v240_v28 }
  0x1e   :  { %115 = vperm.xlu1 %826, %v34_v22   ;;  %67 = vperm.xlu0 %825, %v18_v23  }
  0x1f   :  { %743 = vmatprep.subr.mxu0 %v239_v31  ;;  %807 = vmatprep.subr.mxu1 %v239_v31 }
  0x20   :  { %744 = vmatpush3.msra.mxu0 %v239_v31  ;;  %820 = vmatpush3.msra.mxu1 %v239_v31 }
  0x21   :  { %745 = vmatprep.subr.mxu0 %v238_v32  ;;  %808 = vmatprep.subr.mxu1 %v238_v32 }
  0x22   :  { %118 = vperm.xlu1 %826, %v35_v26   ;;  %70 = vperm.xlu0 %825, %v19_v27  }
  0x23   :  { %746 = vmatpush3.msra.mxu0 %v238_v32  ;;  %821 = vmatpush3.msra.mxu1 %v238_v32 }
  0x24   :  { %747 = vmatprep.subr.mxu0 %v237_v35  ;;  %809 = vmatprep.subr.mxu1 %v237_v35 }
  0x25   :  { %748 = vmatpush3.msra.mxu0 %v237_v35  ;;  %822 = vmatpush3.msra.mxu1 %v237_v35 }
  0x26   :  { %121 = vperm.xlu1 %826, %v36_v29   ;;  %73 = vperm.xlu0 %825, %v20_v30  }
  0x2a   :  { %124 = vperm.xlu1 %826, %v37_v33   ;;  %76 = vperm.xlu0 %825, %v21_v34  }
  0x2e   :  { %127 = vperm.xlu1 %826, %v38_v36   ;;  %79 = vperm.xlu0 %825, %v22_v37  }
  0x32   :  { %130 = vperm.xlu1 %826, %v39_v38   ;;  %82 = vperm.xlu0 %825, %v23_v39  }
  0x36   :  { %133 = vperm.xlu1 %826, %v40_v40   ;;  %85 = vperm.xlu0 %825, %v24_v41  }
  0x3a   :  { %136 = vperm.xlu1 %826, %v41_v42   ;;  %88 = vperm.xlu0 %825, %v25_v43  }
  0x3e   :  { %139 = vperm.xlu1 %826, %v42_v44   ;;  %91 = vperm.xlu0 %825, %v26_v45  }
  0x7d   :  { %v50_v48 = vpop.permute.xlu1 %49  ;;  %v47_v49 = vpop.permute.xlu0 %46 }
  0x7e   :  { %vm142_vm2 = vcmp.eq.s32.totalorder %v979_v47, %v50_v48  ;;  %vm141_vm3 = vcmp.eq.s32.totalorder %v979_v47, %v47_v49 }
  0x7f   :  { %v614_v51 = vsel %vm142_vm2, 1.0, %v828_v50  ;;  %v613_v52 = vsel %vm141_vm3, 1.0, %v828_v50 }
  0x80   :  { %749 = vmatprep.mubr.msk.f32.mxu0 %vm250_vm1, %v613_v52 }
  0x81   :  { %v98_v53 = vpop.permute.xlu1 %97  ;;  %750 = vmatmul.mubr.msk.f32.vlgmr.msra.gmra.mxu0 %vm250_vm1, %v614_v51  ;;  %v95_v54 = vpop.permute.xlu0 %94 }
  0x82   :  { %vm158_vm4 = vcmp.eq.s32.totalorder %v979_v47, %v98_v53  ;;  %vm157_vm5 = vcmp.eq.s32.totalorder %v979_v47, %v95_v54 }
  0x83   :  { %v630_v55 = vsel %vm158_vm4, 1.0, %v828_v50  ;;  %v629_v56 = vsel %vm157_vm5, 1.0, %v828_v50 }
  0x84   :  { %773 = vmatprep.mubr.msk.f32.mxu1 %vm250_vm1, %v629_v56 }
  0x85   :  { %v101_v57 = vpop.permute.xlu1 %100  ;;  %774 = vmatmul.mubr.msk.f32.vlgmr.msra.gmra.mxu1 %vm250_vm1, %v630_v55  ;;  %v53_v58 = vpop.permute.xlu0 %52 }
  0x86   :  { %vm159_vm6 = vcmp.eq.s32.totalorder %v979_v47, %v101_v57  ;;  %vm143_vm7 = vcmp.eq.s32.totalorder %v979_v47, %v53_v58 }
  0x87   :  { %v631_v59 = vsel %vm159_vm6, 1.0, %v828_v50  ;;  %v615_v60 = vsel %vm143_vm7, 1.0, %v828_v50 }
  0x88   :  { %752 = vmatprep.mubr.msk.f32.mxu0 %vm250_vm1, %v615_v60  ;;  %776 = vmatprep.mubr.msk.f32.mxu1 %vm250_vm1, %v631_v59 }
  0x89   :  { %v104_v61 = vpop.permute.xlu1 %103  ;;  %v56_v62 = vpop.permute.xlu0 %55 }
  0x8a   :  { %vm160_vm8 = vcmp.eq.s32.totalorder %v979_v47, %v104_v61  ;;  %vm144_vm9 = vcmp.eq.s32.totalorder %v979_v47, %v56_v62 }
  0x8b   :  { %v632_v63 = vsel %vm160_vm8, 1.0, %v828_v50  ;;  %v616_v0 = vsel %vm144_vm9, 1.0, %v828_v50 }
  0x8c   :  { %753 = vmatmul.mubr.msk.f32.gmra.mxu0 %vm250_vm1, %v616_v0  ;;  %777 = vmatmul.mubr.msk.f32.gmra.mxu1 %vm250_vm1, %v632_v63 }
  0x8d   :  { %v107_v1 = vpop.permute.xlu1 %106  ;;  %v59_v2 = vpop.permute.xlu0 %58 }
  0x8e   :  { %vm161_vm10 = vcmp.eq.s32.totalorder %v979_v47, %v107_v1  ;;  %vm145_vm11 = vcmp.eq.s32.totalorder %v979_v47, %v59_v2 }
  0x8f   :  { %v633_v3 = vsel %vm161_vm10, 1.0, %v828_v50  ;;  %v617_v4 = vsel %vm145_vm11, 1.0, %v828_v50 }
  0x90   :  { %755 = vmatprep.mubr.msk.f32.mxu0 %vm250_vm1, %v617_v4  ;;  %779 = vmatprep.mubr.msk.f32.mxu1 %vm250_vm1, %v633_v3 }
  0x91   :  { %v110_v5 = vpop.permute.xlu1 %109  ;;  %v62_v6 = vpop.permute.xlu0 %61 }
  0x92   :  { %vm162_vm12 = vcmp.eq.s32.totalorder %v979_v47, %v110_v5  ;;  %vm146_vm13 = vcmp.eq.s32.totalorder %v979_v47, %v62_v6 }
  0x93   :  { %v634_v7 = vsel %vm162_vm12, 1.0, %v828_v50  ;;  %v618_v8 = vsel %vm146_vm13, 1.0, %v828_v50 }
  0x94   :  { %756 = vmatmul.mubr.msk.f32.gmra.mxu0 %vm250_vm1, %v618_v8  ;;  %780 = vmatmul.mubr.msk.f32.gmra.mxu1 %vm250_vm1, %v634_v7 }
  0x95   :  { %v113_v9 = vpop.permute.xlu1 %112  ;;  %v65_v10 = vpop.permute.xlu0 %64 }
  0x96   :  { %vm163_vm14 = vcmp.eq.s32.totalorder %v979_v47, %v113_v9  ;;  %vm147_vm15 = vcmp.eq.s32.totalorder %v979_v47, %v65_v10 }
  0x97   :  { %v635_v11 = vsel %vm163_vm14, 1.0, %v828_v50  ;;  %v619_v12 = vsel %vm147_vm15, 1.0, %v828_v50 }
  0x98   :  { %758 = vmatprep.mubr.msk.f32.mxu0 %vm250_vm1, %v619_v12  ;;  %782 = vmatprep.mubr.msk.f32.mxu1 %vm250_vm1, %v635_v11 }
  0x99   :  { %v116_v13 = vpop.permute.xlu1 %115  ;;  %v68_v14 = vpop.permute.xlu0 %67 }
  0x9a   :  { %vm164_vm0 = vcmp.eq.s32.totalorder %v979_v47, %v116_v13  ;;  %vm148_vm2 = vcmp.eq.s32.totalorder %v979_v47, %v68_v14 }
  0x9b   :  { %v636_v15 = vsel %vm164_vm0, 1.0, %v828_v50  ;;  %v620_v16 = vsel %vm148_vm2, 1.0, %v828_v50 }
  0x9c   :  { %759 = vmatmul.mubr.msk.f32.gmra.mxu0 %vm250_vm1, %v620_v16  ;;  %783 = vmatmul.mubr.msk.f32.gmra.mxu1 %vm250_vm1, %v636_v15 }
  0x9d   :  { %v119_v17 = vpop.permute.xlu1 %118  ;;  %v71_v18 = vpop.permute.xlu0 %70 }
  0x9e   :  { %vm165_vm3 = vcmp.eq.s32.totalorder %v979_v47, %v119_v17  ;;  %vm149_vm4 = vcmp.eq.s32.totalorder %v979_v47, %v71_v18 }
  0x9f   :  { %v637_v19 = vsel %vm165_vm3, 1.0, %v828_v50  ;;  %v621_v20 = vsel %vm149_vm4, 1.0, %v828_v50  ;;  %vm576_vm4 = vcmask 261120  }
  0xa0   :  { %761 = vmatprep.mubr.msk.f32.mxu0 %vm250_vm1, %v621_v20  ;;  %785 = vmatprep.mubr.msk.f32.mxu1 %vm250_vm1, %v637_v19 }
  0xa1   :  { %v122_v21 = vpop.permute.xlu1 %121  ;;  %v74_v22 = vpop.permute.xlu0 %73 }
  0xa2   :  { %vm166_vm5 = vcmp.eq.s32.totalorder %v979_v47, %v122_v21  ;;  %vm150_vm6 = vcmp.eq.s32.totalorder %v979_v47, %v74_v22 }
  0xa3   :  { %v638_v23 = vsel %vm166_vm5, 1.0, %v828_v50  ;;  %v622_v24 = vsel %vm150_vm6, 1.0, %v828_v50 }
  0xa4   :  { %762 = vmatmul.mubr.msk.f32.gmra.mxu0 %vm250_vm1, %v622_v24  ;;  %786 = vmatmul.mubr.msk.f32.gmra.mxu1 %vm250_vm1, %v638_v23 }
  0xa5   :  { %v125_v25 = vpop.permute.xlu1 %124  ;;  %v77_v26 = vpop.permute.xlu0 %76 }
  0xa6   :  { %vm167_vm7 = vcmp.eq.s32.totalorder %v979_v47, %v125_v25  ;;  %vm151_vm8 = vcmp.eq.s32.totalorder %v979_v47, %v77_v26 }
  0xa7   :  { %v639_v27 = vsel %vm167_vm7, 1.0, %v828_v50  ;;  %v623_v28 = vsel %vm151_vm8, 1.0, %v828_v50 }
  0xa8   :  { %764 = vmatprep.mubr.msk.f32.mxu0 %vm250_vm1, %v623_v28  ;;  %788 = vmatprep.mubr.msk.f32.mxu1 %vm250_vm1, %v639_v27 }
  0xa9   :  { %v128_v29 = vpop.permute.xlu1 %127  ;;  %v80_v30 = vpop.permute.xlu0 %79 }
  0xaa   :  { %vm168_vm9 = vcmp.eq.s32.totalorder %v979_v47, %v128_v29  ;;  %vm152_vm10 = vcmp.eq.s32.totalorder %v979_v47, %v80_v30 }
  0xab   :  { %v640_v31 = vsel %vm168_vm9, 1.0, %v828_v50  ;;  %v624_v32 = vsel %vm152_vm10, 1.0, %v828_v50 }
  0xac   :  { %765 = vmatmul.mubr.msk.f32.gmra.mxu0 %vm250_vm1, %v624_v32  ;;  %789 = vmatmul.mubr.msk.f32.gmra.mxu1 %vm250_vm1, %v640_v31 }
  0xad   :  { %v131_v33 = vpop.permute.xlu1 %130  ;;  %v83_v34 = vpop.permute.xlu0 %82 }
  0xae   :  { %vm169_vm11 = vcmp.eq.s32.totalorder %v979_v47, %v131_v33  ;;  %vm153_vm12 = vcmp.eq.s32.totalorder %v979_v47, %v83_v34 }
  0xaf   :  { %v641_v35 = vsel %vm169_vm11, 1.0, %v828_v50  ;;  %v625_v36 = vsel %vm153_vm12, 1.0, %v828_v50 }
  0xb0   :  { %767 = vmatprep.mubr.msk.f32.mxu0 %vm250_vm1, %v625_v36  ;;  %791 = vmatprep.mubr.msk.f32.mxu1 %vm250_vm1, %v641_v35 }
  0xb1   :  { %v134_v37 = vpop.permute.xlu1 %133  ;;  %v86_v38 = vpop.permute.xlu0 %85 }
  0xb2   :  { %vm170_vm13 = vcmp.eq.s32.totalorder %v979_v47, %v134_v37  ;;  %vm154_vm14 = vcmp.eq.s32.totalorder %v979_v47, %v86_v38 }
  0xb3   :  { %v642_v39 = vsel %vm170_vm13, 1.0, %v828_v50  ;;  %v626_v40 = vsel %vm154_vm14, 1.0, %v828_v50 }
  0xb4   :  { %768 = vmatmul.mubr.msk.f32.gmra.mxu0 %vm250_vm1, %v626_v40  ;;  %792 = vmatmul.mubr.msk.f32.gmra.mxu1 %vm250_vm1, %v642_v39 }
  0xb5   :  { %v137_v41 = vpop.permute.xlu1 %136  ;;  %v89_v42 = vpop.permute.xlu0 %88 }
  0xb6   :  { %vm171_vm15 = vcmp.eq.s32.totalorder %v979_v47, %v137_v41  ;;  %vm155_vm0 = vcmp.eq.s32.totalorder %v979_v47, %v89_v42 }
  0xb7   :  { %v643_v43 = vsel %vm171_vm15, 1.0, %v828_v50  ;;  %v627_v44 = vsel %vm155_vm0, 1.0, %v828_v50 }
  0xb8   :  { %770 = vmatprep.mubr.msk.f32.mxu0 %vm250_vm1, %v627_v44  ;;  %794 = vmatprep.mubr.msk.f32.mxu1 %vm250_vm1, %v643_v43 }
  0xb9   :  { %v140_v45 = vpop.permute.xlu1 %139  ;;  %v92_v46 = vpop.permute.xlu0 %91 }
  0xba   :  { %vm172_vm2 = vcmp.eq.s32.totalorder %v979_v47, %v140_v45  ;;  %vm156_vm3 = vcmp.eq.s32.totalorder %v979_v47, %v92_v46 }
  0xbb   :  { %v644_v48 = vsel %vm172_vm2, 1.0, %v828_v50  ;;  %v628_v49 = vsel %vm156_vm3, 1.0, %v828_v50 }
  0xbc   :  { %771 = vmatmul.mubr.msk.f32.gmra.mxu0 %vm250_vm1, %v628_v49  ;;  %795 = vmatmul.mubr.msk.f32.gmra.mxu1 %vm250_vm1, %v644_v48 }
 0x141   :  { %v751_v51 = vpop.f32.mrf.mxu0 }
 0x142   :  { %578 = vst.msk [vmem:[%s1207_s2 + $0x8] sm:$0xff] %vm576_vm4, %v751_v51 }
 0x143   :  { %v417_v52 = vpop.f32.mrf.mxu0 }
 0x144   :  { %577 = vst.msk [vmem:[%s1207_s2] sm:$0xff] %vm576_vm4, %v417_v52 }
 0x145   :  { %v775_v47 = vpop.f32.mrf.mxu1 }
 0x146   :  { %594 = vst.msk [vmem:[%s1207_s2 + $0x88] sm:$0xff] %vm576_vm4, %v775_v47 }
 0x147   :  { %v497_v50 = vpop.f32.mrf.mxu1 }
 0x148   :  { %593 = vst.msk [vmem:[%s1207_s2 + $0x80] sm:$0xff] %vm576_vm4, %v497_v50 }
 0x14c   :  { %v754_v53 = vpop.f32.mrf.mxu0  ;;  %v778_v54 = vpop.f32.mrf.mxu1 }
 0x14d   :  { %580 = vst.msk [vmem:[%s1207_s2 + $0x18] sm:$0xff] %vm576_vm4, %v754_v53  ;;  %596 = vst.msk [vmem:[%s1207_s2 + $0x98] sm:$0xff] %vm576_vm4, %v778_v54 }
 0x14e   :  { %v427_v55 = vpop.f32.mrf.mxu0  ;;  %v507_v56 = vpop.f32.mrf.mxu1 }
 0x14f   :  { %579 = vst.msk [vmem:[%s1207_s2 + $0x10] sm:$0xff] %vm576_vm4, %v427_v55  ;;  %595 = vst.msk [vmem:[%s1207_s2 + $0x90] sm:$0xff] %vm576_vm4, %v507_v56 }
 0x154   :  { %v757_v57 = vpop.f32.mrf.mxu0  ;;  %v781_v58 = vpop.f32.mrf.mxu1 }
 0x155   :  { %582 = vst.msk [vmem:[%s1207_s2 + $0x28] sm:$0xff] %vm576_vm4, %v757_v57  ;;  %598 = vst.msk [vmem:[%s1207_s2 + $0xa8] sm:$0xff] %vm576_vm4, %v781_v58 }
 0x156   :  { %v437_v59 = vpop.f32.mrf.mxu0  ;;  %v517_v60 = vpop.f32.mrf.mxu1 }
 0x157   :  { %581 = vst.msk [vmem:[%s1207_s2 + $0x20] sm:$0xff] %vm576_vm4, %v437_v59  ;;  %597 = vst.msk [vmem:[%s1207_s2 + $0xa0] sm:$0xff] %vm576_vm4, %v517_v60 }
 0x15c   :  { %v760_v61 = vpop.f32.mrf.mxu0  ;;  %v784_v62 = vpop.f32.mrf.mxu1 }
 0x15d   :  { %584 = vst.msk [vmem:[%s1207_s2 + $0x38] sm:$0xff] %vm576_vm4, %v760_v61  ;;  %600 = vst.msk [vmem:[%s1207_s2 + $0xb8] sm:$0xff] %vm576_vm4, %v784_v62 }
 0x15e   :  { %v447_v63 = vpop.f32.mrf.mxu0  ;;  %v527_v0 = vpop.f32.mrf.mxu1 }
 0x15f   :  { %583 = vst.msk [vmem:[%s1207_s2 + $0x30] sm:$0xff] %vm576_vm4, %v447_v63  ;;  %599 = vst.msk [vmem:[%s1207_s2 + $0xb0] sm:$0xff] %vm576_vm4, %v527_v0 }
 0x164   :  { %v763_v1 = vpop.f32.mrf.mxu0  ;;  %v787_v2 = vpop.f32.mrf.mxu1 }
 0x165   :  { %586 = vst.msk [vmem:[%s1207_s2 + $0x48] sm:$0xff] %vm576_vm4, %v763_v1  ;;  %602 = vst.msk [vmem:[%s1207_s2 + $0xc8] sm:$0xff] %vm576_vm4, %v787_v2 }
 0x166   :  { %v457_v3 = vpop.f32.mrf.mxu0  ;;  %v537_v4 = vpop.f32.mrf.mxu1 }
 0x167   :  { %585 = vst.msk [vmem:[%s1207_s2 + $0x40] sm:$0xff] %vm576_vm4, %v457_v3  ;;  %601 = vst.msk [vmem:[%s1207_s2 + $0xc0] sm:$0xff] %vm576_vm4, %v537_v4 }
 0x16c   :  { %v766_v5 = vpop.f32.mrf.mxu0  ;;  %v790_v6 = vpop.f32.mrf.mxu1 }
 0x16d   :  { %588 = vst.msk [vmem:[%s1207_s2 + $0x58] sm:$0xff] %vm576_vm4, %v766_v5  ;;  %604 = vst.msk [vmem:[%s1207_s2 + $0xd8] sm:$0xff] %vm576_vm4, %v790_v6 }
 0x16e   :  { %v467_v7 = vpop.f32.mrf.mxu0  ;;  %v547_v8 = vpop.f32.mrf.mxu1 }
 0x16f   :  { %587 = vst.msk [vmem:[%s1207_s2 + $0x50] sm:$0xff] %vm576_vm4, %v467_v7  ;;  %603 = vst.msk [vmem:[%s1207_s2 + $0xd0] sm:$0xff] %vm576_vm4, %v547_v8 }
 0x174   :  { %v769_v9 = vpop.f32.mrf.mxu0  ;;  %v793_v10 = vpop.f32.mrf.mxu1 }
 0x175   :  { %590 = vst.msk [vmem:[%s1207_s2 + $0x68] sm:$0xff] %vm576_vm4, %v769_v9  ;;  %606 = vst.msk [vmem:[%s1207_s2 + $0xe8] sm:$0xff] %vm576_vm4, %v793_v10 }
 0x176   :  { %v477_v11 = vpop.f32.mrf.mxu0  ;;  %v557_v12 = vpop.f32.mrf.mxu1 }
 0x177   :  { %589 = vst.msk [vmem:[%s1207_s2 + $0x60] sm:$0xff] %vm576_vm4, %v477_v11  ;;  %605 = vst.msk [vmem:[%s1207_s2 + $0xe0] sm:$0xff] %vm576_vm4, %v557_v12 }
 0x17c   :  { %v772_v13 = vpop.f32.mrf.mxu0  ;;  %v796_v14 = vpop.f32.mrf.mxu1 }
 0x17d   :  { %592 = vst.msk [vmem:[%s1207_s2 + $0x78] sm:$0xff] %vm576_vm4, %v772_v13  ;;  %608 = vst.msk [vmem:[%s1207_s2 + $0xf8] sm:$0xff] %vm576_vm4, %v796_v14 }
 0x17e   :  { %v487_v15 = vpop.f32.mrf.mxu0  ;;  %v567_v16 = vpop.f32.mrf.mxu1 }
 0x17f   :  { %591 = vst.msk [vmem:[%s1207_s2 + $0x70] sm:$0xff] %vm576_vm4, %v487_v15  ;;  %607 = vst.msk [vmem:[%s1207_s2 + $0xf0] sm:$0xff] %vm576_vm4, %v567_v16 }

</bundles_post_ra>
